<compile_context>
chip_gen: v7x
topology: tpu7x:2x2x1
jax: 0.10.0
libtpu: 0.0.40
codegen_flags: <defaults>
</compile_context>

<pallas_src>
import functools

import jax
import jax.numpy as jnp
import numpy as np
from jax.experimental import pallas as pl
from jax.experimental.pallas import tpu as pltpu

IOU_THRESHOLD = 0.5
PENALTY_FACTOR = 0.1


def yolo_loss_kernel(yhat_ref, ygt_ref, obj_ref, out_ref, *,
                     n_pred_real, approx_recip):
    """One grid step = Bt images.

    yhat_ref : (Bt, 4, Np)  pred boxes, coords on sublanes, preds lane-dense
    ygt_ref  : (Bt, Ng, 4)  GT boxes (per-coordinate (Ng, 1) columns)
    obj_ref  : (Bt, 1, Np)  objectness logits, lane-dense
    out_ref  : (1, 1, Bt)   per-image loss partials, lane-dense
    Np is padded to a multiple of 128; `n_pred_real` masks the padded lanes.
    """
    yhat = yhat_ref[...]                                # (Bt, 4, Np)
    ygt = ygt_ref[...]                                  # (Bt, Ng, 4)
    obj = obj_ref[...][:, 0, :]                         # (Bt, Np)

    n_pred = yhat.shape[2]
    n_gt = ygt.shape[1]

    # ---- prediction corners on packed (Bt, 2, Np) slabs --------------------
    p_xy = yhat[:, 0:2, :]
    p_wh = yhat[:, 2:4, :]
    p_half = p_wh * 0.5
    p_lo = p_xy - p_half                                # x1, y1
    p_hi = p_xy + p_half                                # x2, y2
    area_p = p_wh[:, 0:1, :] * p_wh[:, 1:2, :]          # (Bt, 1, Np)

    # ---- GT coordinates as (Bt, Ng, 1) columns ------------------------------
    gx = ygt[:, :, 0:1]
    gy = ygt[:, :, 1:2]
    gw = ygt[:, :, 2:3]
    gh = ygt[:, :, 3:4]
    ghw = gw * 0.5
    ghh = gh * 0.5
    g_x1, g_x2 = gx - ghw, gx + ghw
    g_y1, g_y2 = gy - ghh, gy + ghh
    area_g = gw * gh                                    # (Bt, Ng, 1)

    # ---- pairwise IoU, (Bt, Ng, Np): GT on sublanes, preds on lanes ---------
    inter_w = jnp.maximum(
        jnp.minimum(p_hi[:, 0:1, :], g_x2) - jnp.maximum(p_lo[:, 0:1, :], g_x1), 0.0)
    inter_h = jnp.maximum(
        jnp.minimum(p_hi[:, 1:2, :], g_y2) - jnp.maximum(p_lo[:, 1:2, :], g_y1), 0.0)
    inter_area = inter_w * inter_h
    union = jnp.maximum(area_p + area_g - inter_area, 1e-12)   # NaN-proof
    if approx_recip:
        iou = inter_area * pl.reciprocal(union, approx=True)   # EUP slot
    else:
        iou = inter_area / union                                # exact (default)

    # ---- pairwise squared distance for the matched-GT MSE (exact) ----------
    dx = gx - p_xy[:, 0:1, :]
    dy = gy - p_xy[:, 1:2, :]
    dw = gw - p_wh[:, 0:1, :]
    dh = gh - p_wh[:, 1:2, :]
    d2 = dx * dx + dy * dy + dw * dw + dh * dh          # (Bt, Ng, Np)

    # ---- per-pred max / first-occurrence argmax over the GT (sublane) axis --
    max_iou = jnp.max(iou, axis=1)                      # (Bt, Np)
    lane_valid = jax.lax.broadcasted_iota(
        jnp.int32, (1, n_pred), 1) < n_pred_real        # (1, Np) padding mask
    matched_f = jnp.where(
        jnp.logical_and(max_iou > IOU_THRESHOLD, lane_valid), 1.0, 0.0)  # (Bt, Np)

    g_idx = jax.lax.broadcasted_iota(jnp.int32, (1, n_gt, 1), 1)
    is_max = iou == max_iou[:, None, :]
    first_idx = jnp.min(jnp.where(is_max, g_idx, n_gt), axis=1)   # (Bt, Np)
    onehot = g_idx == first_idx[:, None, :]                       # (Bt, Ng, Np)

    # ---- localization MSE over matched preds (mean over n_matched * 4) ------
    d2_sel = jnp.sum(jnp.where(onehot, d2, 0.0), axis=1)          # (Bt, Np)
    loc_num = jnp.sum(d2_sel * matched_f, axis=1, keepdims=True)  # (Bt, 1)
    n_matched = jnp.sum(matched_f, axis=1, keepdims=True)         # (Bt, 1)
    loc_loss = jnp.where(n_matched > 0.0,
                         loc_num / jnp.maximum(n_matched * 4.0, 1.0),
                         0.0)

    # ---- penalty for unmatched (real) predictions ---------------------------
    penalty = PENALTY_FACTOR * (float(n_pred_real) - n_matched)   # (Bt, 1)

    # ---- BCEWithLogits(obj, matched), mean over real preds ------------------
    bce = (jnp.maximum(obj, 0.0) - obj * matched_f
           + jnp.log(1.0 + jnp.exp(-jnp.abs(obj))))               # (Bt, Np)
    bce = jnp.where(lane_valid, bce, 0.0)
    obj_loss = jnp.sum(bce, axis=1, keepdims=True) * (1.0 / float(n_pred_real))

    total = loc_loss + obj_loss + penalty                         # (Bt, 1)
    # lane-dense store: images on the lane axis of the (1, 1, Bt) output block
    out_ref[...] = jnp.transpose(total, (1, 0))[None, :, :]


def _choose_batch_tile(batch, n_pred, n_gt, vmem_cap):
    """Images per grid step: sized against per-chip VMEM (double-buffered input
    tiles + the live (Ng, Np) f32 pairwise slabs), and capped so the grid has
    at least two steps ("parallel" can then use both v7x TensorCores)."""
    budget = min(vmem_cap // 2, 48 << 20)
    per_img = (4 * (10 * n_gt * n_pred + 32 * n_pred + 32 * n_gt)    # live compute slabs
               + 2 * 4 * (5 * n_pred + 4 * n_gt + 8))                # 2x-buffered I/O tiles
    bt = int(max(1, budget // max(per_img, 1)))
    bt = min(bt, batch)
    if batch >= 2:
        bt = min(bt, -(-batch // 2))        # guarantee >= 2 grid steps (megacore)
    num_tiles = -(-batch // bt)
    return bt, num_tiles


def yolo_loss(batch_y_hat, batch_y, batch_obj_scores, *, approx_reciprocal=False):
    B, n_pred_real, _ = batch_y_hat.shape
    n_gt = batch_y.shape[1]

    # pad the prediction axis to a multiple of 128 -> lane-dense slabs in-kernel
    n_pred = ((n_pred_real + 127) // 128) * 128
    pad_p = n_pred - n_pred_real

    yhat = jnp.transpose(batch_y_hat.astype(jnp.float32), (0, 2, 1))   # (B, 4, Np)
    obj = batch_obj_scores.astype(jnp.float32)[:, None, :]             # (B, 1, Np)
    ygt = batch_y.astype(jnp.float32)                                  # (B, Ng, 4)
    if pad_p:
        yhat = jnp.pad(yhat, ((0, 0), (0, 0), (0, pad_p)))
        obj = jnp.pad(obj, ((0, 0), (0, 0), (0, pad_p)))

    try:
        vmem_cap = int(getattr(pltpu.get_tpu_info(), "vmem_capacity_bytes",
                               64 << 20))
    except Exception:
        vmem_cap = 64 << 20    # conservative (v7x per-TC) fallback

    bt, num_tiles = _choose_batch_tile(B, n_pred, n_gt, vmem_cap)
    b_pad = bt * num_tiles
    if b_pad != B:
        pad_b = b_pad - B
        yhat = jnp.pad(yhat, ((0, pad_b), (0, 0), (0, 0)))
        obj = jnp.pad(obj, ((0, pad_b), (0, 0), (0, 0)))
        ygt = jnp.pad(ygt, ((0, pad_b), (0, 0), (0, 0)))

    kernel = functools.partial(yolo_loss_kernel,
                               n_pred_real=n_pred_real,
                               approx_recip=approx_reciprocal)

    per_image = pl.pallas_call(
        kernel,
        out_shape=jax.ShapeDtypeStruct((num_tiles, 1, bt), jnp.float32),
        grid=(num_tiles,),
        in_specs=[
            pl.BlockSpec((bt, 4, n_pred), lambda t: (t, 0, 0)),
            pl.BlockSpec((bt, n_gt, 4), lambda t: (t, 0, 0)),
            pl.BlockSpec((bt, 1, n_pred), lambda t: (t, 0, 0)),
        ],
        out_specs=pl.BlockSpec((1, 1, bt), lambda t: (t, 0, 0)),
        compiler_params=pltpu.CompilerParams(
            dimension_semantics=("parallel",),
            vmem_limit_bytes=int(min(vmem_cap, 128 << 20) * 7 // 8),
            allow_input_fusion=[True, True, True]),
    )(yhat, ygt, obj)

    # drop batch padding, then mean over the real batch
    return jnp.sum(per_image.reshape(-1)[:B]) / B


def reference_loss(batch_y_hat, batch_y, batch_obj_scores,
                   thr=IOU_THRESHOLD, pf=PENALTY_FACTOR):
    """Pure-numpy reference mirroring the PyTorch forward semantics."""
    yh_all = np.asarray(batch_y_hat, np.float32)
    y_all = np.asarray(batch_y, np.float32)
    obj_all = np.asarray(batch_obj_scores, np.float32)
    B = yh_all.shape[0]
    total = 0.0
    for b in range(B):
        yh, y, obj = yh_all[b], y_all[b], obj_all[b]
        b1 = np.concatenate([yh[:, :2] - yh[:, 2:] / 2, yh[:, :2] + yh[:, 2:] / 2], -1)
        b2 = np.concatenate([y[:, :2] - y[:, 2:] / 2, y[:, :2] + y[:, 2:] / 2], -1)
        inter = np.clip(np.minimum(b1[:, None, 2:], b2[None, :, 2:]) -
                        np.maximum(b1[:, None, :2], b2[None, :, :2]), 0, None)
        inter_area = inter[..., 0] * inter[..., 1]
        a1 = (b1[:, 2] - b1[:, 0]) * (b1[:, 3] - b1[:, 1])
        a2 = (b2[:, 2] - b2[:, 0]) * (b2[:, 3] - b2[:, 1])
        iou = inter_area / (a1[:, None] + a2[None, :] - inter_area)
        max_iou = iou.max(1)
        idx = iou.argmax(1)
        matched = max_iou > thr
        if matched.sum() > 0:
            mp = yh[matched]
            mg = y[idx[matched]]
            loc = float(((mp - mg) ** 2).mean())
        else:
            loc = 0.0
        penalty = pf * float((~matched).sum())
        z = matched.astype(np.float32)
        bce = np.maximum(obj, 0) - obj * z + np.log1p(np.exp(-np.abs(obj)))
        total += loc + float(bce.mean()) + penalty
    return total / B


if __name__ == "__main__":
    key = jax.random.PRNGKey(0)
    B, Np, Ng = 2, 16, 8

    k1, k2, k3, k4 = jax.random.split(key, 4)
    gt_centers = jax.random.uniform(k1, (B, Ng, 2), minval=0.2, maxval=0.8)
    gt_wh = jax.random.uniform(k2, (B, Ng, 2), minval=0.15, maxval=0.4)
    batch_y = jnp.concatenate([gt_centers, gt_wh], axis=-1)            # (B, Ng, 4)

    # preds = GT boxes tiled twice + perturbation -> mix of matched / unmatched
    noise = jax.random.normal(k3, (B, Np, 4)) * 0.05
    batch_y_hat = jnp.tile(batch_y, (1, Np // Ng, 1)) + noise          # (B, Np, 4)
    batch_obj_scores = jax.random.normal(k4, (B, Np))                  # (B, Np)

    loss = jax.block_until_ready(yolo_loss(batch_y_hat, batch_y, batch_obj_scores))
    ref = reference_loss(batch_y_hat, batch_y, batch_obj_scores)

    assert np.allclose(float(loss), float(ref), rtol=1e-4, atol=1e-5), (float(loss), float(ref))
    print("KERNEL_OK")
</pallas_src>

<mosaic_0001>
module attributes {stable_mosaic.version = 11 : i64} {
  func.func @yolo_loss_kernel(%arg0: i32, %arg1: memref<1x4x128xf32, #tpu.memory_space<vmem>>, %arg2: memref<1x8x4xf32, #tpu.memory_space<vmem>>, %arg3: memref<1x1x128xf32, #tpu.memory_space<vmem>>, %arg4: memref<1x1x1xf32, #tpu.memory_space<vmem>>) attributes {dimension_semantics = [#tpu.dimension_semantics<parallel>], iteration_bounds = array<i64: 2>, scalar_prefetch = 0 : i64, scratch_operands = 0 : i64, tpu.core_type = #tpu.core_type<tc>, window_params = [{transform_indices = @transform_0, window_bounds = array<i64: 1, 4, 128>}, {transform_indices = @transform_1, window_bounds = array<i64: 1, 8, 4>}, {transform_indices = @transform_2, window_bounds = array<i64: 1, 1, 128>}, {transform_indices = @transform_3, window_bounds = array<i64: 1, 1, 1>}]} {
    %c0 = arith.constant 0 : index
    %c0_0 = arith.constant 0 : index
    %c0_1 = arith.constant 0 : index
    %0 = vector.load %arg1[%c0, %c0_0, %c0_1] : memref<1x4x128xf32, #tpu.memory_space<vmem>>, vector<1x4x128xf32>
    %c0_2 = arith.constant 0 : index
    %c0_3 = arith.constant 0 : index
    %c0_4 = arith.constant 0 : index
    %1 = vector.load %arg2[%c0_2, %c0_3, %c0_4] : memref<1x8x4xf32, #tpu.memory_space<vmem>>, vector<1x8x4xf32>
    %c0_5 = arith.constant 0 : index
    %c0_6 = arith.constant 0 : index
    %c0_7 = arith.constant 0 : index
    %2 = vector.load %arg3[%c0_5, %c0_6, %c0_7] : memref<1x1x128xf32, #tpu.memory_space<vmem>>, vector<1x1x128xf32>
    %3 = vector.shape_cast %2 : vector<1x1x128xf32> to vector<1x128xf32>
    %4 = vector.extract_strided_slice %0 {offsets = [0, 0, 0], sizes = [1, 2, 128], strides = [1, 1, 1]} : vector<1x4x128xf32> to vector<1x2x128xf32>
    %5 = vector.extract_strided_slice %0 {offsets = [0, 2, 0], sizes = [1, 2, 128], strides = [1, 1, 1]} : vector<1x4x128xf32> to vector<1x2x128xf32>
    %cst = arith.constant 5.000000e-01 : f32
    %6 = vector.broadcast %cst : f32 to vector<1x2x128xf32>
    %7 = arith.mulf %5, %6 : vector<1x2x128xf32>
    %8 = arith.subf %4, %7 : vector<1x2x128xf32>
    %9 = arith.addf %4, %7 : vector<1x2x128xf32>
    %10 = vector.extract_strided_slice %5 {offsets = [0, 0, 0], sizes = [1, 1, 128], strides = [1, 1, 1]} : vector<1x2x128xf32> to vector<1x1x128xf32>
    %11 = vector.extract_strided_slice %5 {offsets = [0, 1, 0], sizes = [1, 1, 128], strides = [1, 1, 1]} : vector<1x2x128xf32> to vector<1x1x128xf32>
    %12 = arith.mulf %10, %11 : vector<1x1x128xf32>
    %13 = vector.extract_strided_slice %1 {offsets = [0, 0, 0], sizes = [1, 8, 1], strides = [1, 1, 1]} : vector<1x8x4xf32> to vector<1x8x1xf32>
    %14 = vector.extract_strided_slice %1 {offsets = [0, 0, 1], sizes = [1, 8, 1], strides = [1, 1, 1]} : vector<1x8x4xf32> to vector<1x8x1xf32>
    %15 = vector.extract_strided_slice %1 {offsets = [0, 0, 2], sizes = [1, 8, 1], strides = [1, 1, 1]} : vector<1x8x4xf32> to vector<1x8x1xf32>
    %16 = vector.extract_strided_slice %1 {offsets = [0, 0, 3], sizes = [1, 8, 1], strides = [1, 1, 1]} : vector<1x8x4xf32> to vector<1x8x1xf32>
    %cst_8 = arith.constant 5.000000e-01 : f32
    %17 = vector.broadcast %cst_8 : f32 to vector<1x8x1xf32>
    %18 = arith.mulf %15, %17 : vector<1x8x1xf32>
    %cst_9 = arith.constant 5.000000e-01 : f32
    %19 = vector.broadcast %cst_9 : f32 to vector<1x8x1xf32>
    %20 = arith.mulf %16, %19 : vector<1x8x1xf32>
    %21 = arith.subf %13, %18 : vector<1x8x1xf32>
    %22 = arith.addf %13, %18 : vector<1x8x1xf32>
    %23 = arith.subf %14, %20 : vector<1x8x1xf32>
    %24 = arith.addf %14, %20 : vector<1x8x1xf32>
    %25 = arith.mulf %15, %16 : vector<1x8x1xf32>
    %26 = vector.extract_strided_slice %9 {offsets = [0, 0, 0], sizes = [1, 1, 128], strides = [1, 1, 1]} : vector<1x2x128xf32> to vector<1x1x128xf32>
    %27 = vector.broadcast %26 : vector<1x1x128xf32> to vector<1x8x128xf32>
    %28 = vector.broadcast %22 : vector<1x8x1xf32> to vector<1x8x128xf32>
    %29 = arith.minimumf %27, %28 : vector<1x8x128xf32>
    %30 = vector.extract_strided_slice %8 {offsets = [0, 0, 0], sizes = [1, 1, 128], strides = [1, 1, 1]} : vector<1x2x128xf32> to vector<1x1x128xf32>
    %31 = vector.broadcast %30 : vector<1x1x128xf32> to vector<1x8x128xf32>
    %32 = vector.broadcast %21 : vector<1x8x1xf32> to vector<1x8x128xf32>
    %33 = arith.maximumf %31, %32 : vector<1x8x128xf32>
    %34 = arith.subf %29, %33 : vector<1x8x128xf32>
    %cst_10 = arith.constant 0.000000e+00 : f32
    %35 = vector.broadcast %cst_10 : f32 to vector<1x8x128xf32>
    %36 = arith.maximumf %34, %35 : vector<1x8x128xf32>
    %37 = vector.extract_strided_slice %9 {offsets = [0, 1, 0], sizes = [1, 1, 128], strides = [1, 1, 1]} : vector<1x2x128xf32> to vector<1x1x128xf32>
    %38 = vector.broadcast %37 : vector<1x1x128xf32> to vector<1x8x128xf32>
    %39 = vector.broadcast %24 : vector<1x8x1xf32> to vector<1x8x128xf32>
    %40 = arith.minimumf %38, %39 : vector<1x8x128xf32>
    %41 = vector.extract_strided_slice %8 {offsets = [0, 1, 0], sizes = [1, 1, 128], strides = [1, 1, 1]} : vector<1x2x128xf32> to vector<1x1x128xf32>
    %42 = vector.broadcast %41 : vector<1x1x128xf32> to vector<1x8x128xf32>
    %43 = vector.broadcast %23 : vector<1x8x1xf32> to vector<1x8x128xf32>
    %44 = arith.maximumf %42, %43 : vector<1x8x128xf32>
    %45 = arith.subf %40, %44 : vector<1x8x128xf32>
    %cst_11 = arith.constant 0.000000e+00 : f32
    %46 = vector.broadcast %cst_11 : f32 to vector<1x8x128xf32>
    %47 = arith.maximumf %45, %46 : vector<1x8x128xf32>
    %48 = arith.mulf %36, %47 : vector<1x8x128xf32>
    %49 = vector.broadcast %12 : vector<1x1x128xf32> to vector<1x8x128xf32>
    %50 = vector.broadcast %25 : vector<1x8x1xf32> to vector<1x8x128xf32>
    %51 = arith.addf %49, %50 : vector<1x8x128xf32>
    %52 = arith.subf %51, %48 : vector<1x8x128xf32>
    %cst_12 = arith.constant 9.99999996E-13 : f32
    %53 = vector.broadcast %cst_12 : f32 to vector<1x8x128xf32>
    %54 = arith.maximumf %52, %53 : vector<1x8x128xf32>
    %55 = arith.divf %48, %54 : vector<1x8x128xf32>
    %56 = vector.extract_strided_slice %4 {offsets = [0, 0, 0], sizes = [1, 1, 128], strides = [1, 1, 1]} : vector<1x2x128xf32> to vector<1x1x128xf32>
    %57 = vector.broadcast %13 : vector<1x8x1xf32> to vector<1x8x128xf32>
    %58 = vector.broadcast %56 : vector<1x1x128xf32> to vector<1x8x128xf32>
    %59 = arith.subf %57, %58 : vector<1x8x128xf32>
    %60 = vector.extract_strided_slice %4 {offsets = [0, 1, 0], sizes = [1, 1, 128], strides = [1, 1, 1]} : vector<1x2x128xf32> to vector<1x1x128xf32>
    %61 = vector.broadcast %14 : vector<1x8x1xf32> to vector<1x8x128xf32>
    %62 = vector.broadcast %60 : vector<1x1x128xf32> to vector<1x8x128xf32>
    %63 = arith.subf %61, %62 : vector<1x8x128xf32>
    %64 = vector.extract_strided_slice %5 {offsets = [0, 0, 0], sizes = [1, 1, 128], strides = [1, 1, 1]} : vector<1x2x128xf32> to vector<1x1x128xf32>
    %65 = vector.broadcast %15 : vector<1x8x1xf32> to vector<1x8x128xf32>
    %66 = vector.broadcast %64 : vector<1x1x128xf32> to vector<1x8x128xf32>
    %67 = arith.subf %65, %66 : vector<1x8x128xf32>
    %68 = vector.extract_strided_slice %5 {offsets = [0, 1, 0], sizes = [1, 1, 128], strides = [1, 1, 1]} : vector<1x2x128xf32> to vector<1x1x128xf32>
    %69 = vector.broadcast %16 : vector<1x8x1xf32> to vector<1x8x128xf32>
    %70 = vector.broadcast %68 : vector<1x1x128xf32> to vector<1x8x128xf32>
    %71 = arith.subf %69, %70 : vector<1x8x128xf32>
    %72 = arith.mulf %59, %59 : vector<1x8x128xf32>
    %73 = arith.mulf %63, %63 : vector<1x8x128xf32>
    %74 = arith.addf %72, %73 : vector<1x8x128xf32>
    %75 = arith.mulf %67, %67 : vector<1x8x128xf32>
    %76 = arith.addf %74, %75 : vector<1x8x128xf32>
    %77 = arith.mulf %71, %71 : vector<1x8x128xf32>
    %78 = arith.addf %76, %77 : vector<1x8x128xf32>
    %cst_13 = arith.constant dense<0xFF800000> : vector<1x128xf32>
    %79 = vector.multi_reduction <maximumf>, %55, %cst_13 [1] : vector<1x8x128xf32> to vector<1x128xf32>
    %80 = tpu.iota {dimensions = array<i32: 1>} : vector<1x128xi32>
    %c16_i32 = arith.constant 16 : i32
    %81 = vector.broadcast %c16_i32 : i32 to vector<1x128xi32>
    %82 = arith.cmpi slt, %80, %81 : vector<1x128xi32>
    %cst_14 = arith.constant 5.000000e-01 : f32
    %83 = vector.broadcast %cst_14 : f32 to vector<1x128xf32>
    %84 = arith.cmpf ogt, %79, %83 : vector<1x128xf32>
    %85 = arith.andi %84, %82 : vector<1x128xi1>
    %cst_15 = arith.constant 1.000000e+00 : f32
    %cst_16 = arith.constant 0.000000e+00 : f32
    %86 = vector.broadcast %cst_15 : f32 to vector<1x128xf32>
    %87 = vector.broadcast %cst_16 : f32 to vector<1x128xf32>
    %88 = arith.select %85, %86, %87 : vector<1x128xi1>, vector<1x128xf32>
    %89 = tpu.iota {dimensions = array<i32: 1>} : vector<1x8x1xi32>
    %90 = vector.shape_cast %79 : vector<1x128xf32> to vector<1x1x128xf32>
    %91 = vector.broadcast %90 : vector<1x1x128xf32> to vector<1x8x128xf32>
    %92 = arith.cmpf oeq, %55, %91 : vector<1x8x128xf32>
    %c8_i32 = arith.constant 8 : i32
    %93 = vector.shape_cast %89 : vector<1x8x1xi32> to vector<1x8x1xi32>
    %94 = vector.broadcast %93 : vector<1x8x1xi32> to vector<1x8x128xi32>
    %95 = vector.broadcast %c8_i32 : i32 to vector<1x8x128xi32>
    %96 = arith.select %92, %94, %95 : vector<1x8x128xi1>, vector<1x8x128xi32>
    %cst_17 = arith.constant dense<2147483647> : vector<1x128xi32>
    %97 = vector.multi_reduction <minsi>, %96, %cst_17 [1] : vector<1x8x128xi32> to vector<1x128xi32>
    %98 = vector.shape_cast %97 : vector<1x128xi32> to vector<1x1x128xi32>
    %99 = vector.broadcast %89 : vector<1x8x1xi32> to vector<1x8x128xi32>
    %100 = vector.broadcast %98 : vector<1x1x128xi32> to vector<1x8x128xi32>
    %101 = arith.cmpi eq, %99, %100 : vector<1x8x128xi32>
    %cst_18 = arith.constant 0.000000e+00 : f32
    %102 = vector.broadcast %cst_18 : f32 to vector<1x8x128xf32>
    %103 = arith.select %101, %78, %102 : vector<1x8x128xi1>, vector<1x8x128xf32>
    %cst_19 = arith.constant dense<0.000000e+00> : vector<1x128xf32>
    %104 = vector.multi_reduction <add>, %103, %cst_19 [1] : vector<1x8x128xf32> to vector<1x128xf32>
    %105 = arith.mulf %104, %88 : vector<1x128xf32>
    %cst_20 = arith.constant dense<0.000000e+00> : vector<1xf32>
    %106 = vector.multi_reduction <add>, %105, %cst_20 [1] : vector<1x128xf32> to vector<1xf32>
    %107 = vector.shape_cast %106 : vector<1xf32> to vector<1x1xf32>
    %cst_21 = arith.constant dense<0.000000e+00> : vector<1xf32>
    %108 = vector.multi_reduction <add>, %88, %cst_21 [1] : vector<1x128xf32> to vector<1xf32>
    %109 = vector.shape_cast %108 : vector<1xf32> to vector<1x1xf32>
    %cst_22 = arith.constant 0.000000e+00 : f32
    %110 = vector.broadcast %cst_22 : f32 to vector<1x1xf32>
    %111 = arith.cmpf ogt, %109, %110 : vector<1x1xf32>
    %cst_23 = arith.constant 4.000000e+00 : f32
    %112 = vector.broadcast %cst_23 : f32 to vector<1x1xf32>
    %113 = arith.mulf %109, %112 : vector<1x1xf32>
    %cst_24 = arith.constant 1.000000e+00 : f32
    %114 = vector.broadcast %cst_24 : f32 to vector<1x1xf32>
    %115 = arith.maximumf %113, %114 : vector<1x1xf32>
    %116 = arith.divf %107, %115 : vector<1x1xf32>
    %cst_25 = arith.constant 0.000000e+00 : f32
    %117 = vector.broadcast %cst_25 : f32 to vector<1x1xf32>
    %118 = arith.select %111, %116, %117 : vector<1x1xi1>, vector<1x1xf32>
    %cst_26 = arith.constant 1.600000e+01 : f32
    %119 = vector.broadcast %cst_26 : f32 to vector<1x1xf32>
    %120 = arith.subf %119, %109 : vector<1x1xf32>
    %cst_27 = arith.constant 1.000000e-01 : f32
    %121 = vector.broadcast %cst_27 : f32 to vector<1x1xf32>
    %122 = arith.mulf %121, %120 : vector<1x1xf32>
    %cst_28 = arith.constant 0.000000e+00 : f32
    %123 = vector.broadcast %cst_28 : f32 to vector<1x128xf32>
    %124 = arith.maximumf %3, %123 : vector<1x128xf32>
    %125 = arith.mulf %3, %88 : vector<1x128xf32>
    %126 = arith.subf %124, %125 : vector<1x128xf32>
    %127 = math.absf %3 : vector<1x128xf32>
    %cst_29 = arith.constant 0.000000e+00 : f32
    %128 = vector.broadcast %cst_29 : f32 to vector<1x128xf32>
    %129 = arith.subf %128, %127 : vector<1x128xf32>
    %130 = math.exp %129 : vector<1x128xf32>
    %cst_30 = arith.constant 1.000000e+00 : f32
    %131 = vector.broadcast %cst_30 : f32 to vector<1x128xf32>
    %132 = arith.addf %131, %130 : vector<1x128xf32>
    %133 = math.log %132 : vector<1x128xf32>
    %134 = arith.addf %126, %133 : vector<1x128xf32>
    %cst_31 = arith.constant 0.000000e+00 : f32
    %135 = vector.broadcast %cst_31 : f32 to vector<1x128xf32>
    %136 = arith.select %82, %134, %135 : vector<1x128xi1>, vector<1x128xf32>
    %cst_32 = arith.constant dense<0.000000e+00> : vector<1xf32>
    %137 = vector.multi_reduction <add>, %136, %cst_32 [1] : vector<1x128xf32> to vector<1xf32>
    %138 = vector.shape_cast %137 : vector<1xf32> to vector<1x1xf32>
    %cst_33 = arith.constant 6.250000e-02 : f32
    %139 = vector.broadcast %cst_33 : f32 to vector<1x1xf32>
    %140 = arith.mulf %138, %139 : vector<1x1xf32>
    %141 = arith.addf %118, %140 : vector<1x1xf32>
    %142 = arith.addf %141, %122 : vector<1x1xf32>
    %143 = tpu.transpose %142, [1, 0] : vector<1x1xf32> -> vector<1x1xf32>
    %144 = vector.shape_cast %143 : vector<1x1xf32> to vector<1x1x1xf32>
    %c0_34 = arith.constant 0 : index
    %c0_35 = arith.constant 0 : index
    %c0_36 = arith.constant 0 : index
    %145 = vector.load %arg4[%c0_34, %c0_35, %c0_36] : memref<1x1x1xf32, #tpu.memory_space<vmem>>, vector<1x1x1xf32>
    tpu.vector_store %arg4[%c0_34, %c0_35, %c0_36], %144 {strides = array<i32>} : memref<1x1x1xf32, #tpu.memory_space<vmem>>, vector<1x1x1xf32>,
    return
  }
  func.func @transform_0(%arg0: i32) -> (i32, i32, i32) {
    %c0_i32 = arith.constant 0 : i32
    %c0_i32_0 = arith.constant 0 : i32
    %c0_i32_1 = arith.constant 0 : i32
    return %arg0, %c0_i32, %c0_i32_0 : i32, i32, i32
  }
  func.func @transform_1(%arg0: i32) -> (i32, i32, i32) {
    %c0_i32 = arith.constant 0 : i32
    %c0_i32_0 = arith.constant 0 : i32
    %c0_i32_1 = arith.constant 0 : i32
    return %arg0, %c0_i32, %c0_i32_0 : i32, i32, i32
  }
  func.func @transform_2(%arg0: i32) -> (i32, i32, i32) {
    %c0_i32 = arith.constant 0 : i32
    %c0_i32_0 = arith.constant 0 : i32
    %c0_i32_1 = arith.constant 0 : i32
    return %arg0, %c0_i32, %c0_i32_0 : i32, i32, i32
  }
  func.func @transform_3(%arg0: i32) -> (i32, i32, i32) {
    %c0_i32 = arith.constant 0 : i32
    %c0_i32_0 = arith.constant 0 : i32
    %c0_i32_1 = arith.constant 0 : i32
    return %arg0, %c0_i32, %c0_i32_0 : i32, i32, i32
  }
}

</mosaic_0001>

<bundles_post_ra>
// kernel: tpu_custom_call.1
= control target key start
LH: loop header
LB: loop body
LE: loop exit
PB: predicated region body
PF: predicated region fallthrough
CT: control target
= control target key end

     0   :  { %s562_s12 = smov 0   ;;  %s617_s0 = inlined_call_operand.vmem [shape: f32[2,4,128], index: 0, kind: input, shape index: {}]   ;;  %s618_s1 = inlined_call_operand.vmem [shape: f32[2,8,4], index: 1, kind: input, shape index: {}]   ;;  %s619_s2 = inlined_call_operand.vmem [shape: f32[2,1,128], index: 2, kind: input, shape index: {}]   ;;  %s620_s3 = inlined_call_operand.vmem [shape: f32[2,1,1], index: 3, kind: output, shape index: {}]  }
   0x1 LB: > { %s487_s13 = sadd.s32 4294967295, %s533_s12   ;;  %p491_p0 = scmp.ge.s32.totalorder %s533_s12, 1  ;;  %s533_s12 = sphi %s562_s12, %s13_s12  }
   0x2   : > { %p153_p1 = scmp.lt.s32.totalorder %s533_s12, 3 }
   0x4   : > { %p154_p2 = pnand %p491_p0, %p153_p1 }
   0x5   : > { %p181_p3 = scmp.lt.s32.totalorder (!%p154_p2), %s487_s13, 1  ;;  %v535_v0 = vmov (!%p154_p2), 1   ;;  %v536_v1 = vmov (!%p154_p2), 0   ;;  %s537_s18 = smov (!%p154_p2), 126   ;;  %v539_v8 = vmov (!%p154_p2), 3   ;;  %v540_v10 = vmov (!%p154_p2), 2  }
   0x6   : > { %157 = sbr.rel (%p154_p2) target bundleno = 619 (0x26b), region = 32  ;;  %512 = vset.pattern.permute.xlu0 (!%p154_p2), %v535_v0  ;;  %511 = vset.pattern.permute.xlu1 (!%p154_p2), %v536_v1  ;;  %s538_s19 = smov (!%p154_p2), 127   ;;  %v220_v12 = vlaneseq (!%p154_p2)  ;;  %vm378_vm5 = vcmask (!%p154_p2), 1040384   ;;  %vm417_vm10 = vcmask (!%p154_p2), 0  }
   0x8   : > { %v583_v14 = vshrl.u32 (!%p154_p2), %v220_v12, 7  ;;  %v327_v61 = vand.u32 (!%p154_p2), 127, %v220_v12 }
   0xa   : > { %v222_v17 = vsub.s32 (!%p154_p2), 0, %v583_v14  ;;  %v244_v20 = vsub.s32 (!%p154_p2), 1, %v583_v14  ;;  %v265_v30 = vsub.s32 (!%p154_p2), 2, %v583_v14  ;;  %v310_v63 = vsub.s32 (!%p154_p2), 3, %v583_v14 }
   0xb   : > { %vm328_vm0 = vcmp.lt.s32.totalorder (!%p154_p2), %v327_v61, 16 }
   0xd   : > { %s622_s13 = smov (!%p181_p3, %s487_s13), 1 }
   0xe   : > { %s493_s14 = sshll.u32 %s622_s13, 3  ;;  %s492_s20 = sshll.u32 %s622_s13, 2 }
   0xf   : > { %s188_s17 = scalar_lea.vmem %s618_s1, %s493_s14  ;;  %s184_s23 = scalar_lea.vmem %s617_s0, %s492_s20 }
  0x10   : > { %v196_v2 = vld [vmem:[%s188_s17] sm:$0xff]  ;;  %s191_s26 = scalar_lea.vmem %s619_s2, %s622_s13  ;;  %s194_s29 = scalar_lea.vmem %s620_s3, %s622_s13 }
  0x11   : > { %v208_v3 = vmul.f32 0.5, %v196_v2  ;;  %v580_v11 = vld [vmem:[%s184_s23] sm:$0xf] }
  0x12   : > { %v198_v13 = vmul.f32 0.5, %v580_v11  ;;  %v205_v22 = vrot.slane %v580_v11, 1  ;;  %v594_v25 = vld [vmem:[%s191_s26] sm:$0x1]  ;;  %v293_v57 = vrot.slane %v580_v11, %v244_v20  ;;  %v284_v58 = vrot.slane %v580_v11, %v222_v17 }
  0x13   : > { %210 = vrot.lane.b32.xlu0 %v208_v3, %s537_s18  ;;  %v369_v33 = vand.u32 2147483647, %v594_v25 }
  0x14   : > { %v200_v15 = vrot.slane %v198_v13, 2  ;;  %v207_v31 = vmul.f32 %v205_v22, %v580_v11 }
  0x15   : > { %v370_v40 = vsub.f32 0.0, %v369_v33 }
  0x16   : > { %v202_v16 = vsub.f32 %v580_v11, %v200_v15  ;;  %v203_v19 = vadd.f32 %v200_v15, %v580_v11  ;;  %v266_v38 = vrot.slane %v207_v31, %v265_v30  ;;  %v541_v15 = vmov 0.0  }
  0x17   : > { %216 = vrot.lane.b32.xlu0 %v196_v2, %s538_s19  ;;  %v371_v46 = vmul.f32 1.442695, %v370_v40 }
  0x18   : > { %v233_v21 = vrot.slane %v202_v16, %v222_v17  ;;  %v223_v23 = vrot.slane %v203_v19, %v222_v17  ;;  %v245_v26 = vrot.slane %v203_v19, %v244_v20  ;;  %v254_v28 = vrot.slane %v202_v16, %v244_v20 }
  0x19   : > { %519 = vpow2.f32 %v371_v46 }
  0x23   : > { %v520_v49 = vpop.eup %519 }
  0x24   : > { %v373_v52 = vadd.f32 1.0, %v520_v49 }
  0x85   : > { %v211_v4 = vpop.permute.xlu0 %210 }
  0x86   : > { %v214_v5 = vadd.f32 %v211_v4, %v196_v2  ;;  %v213_v6 = vsub.f32 %v196_v2, %v211_v4 }
  0x88   : > { %247 = vperm.xlu0 %512, %v214_v5   ;;  %226 = vperm.xlu1 %511, %v214_v5  }
  0x89   : > { %v217_v7 = vpop.permute.xlu0 %216 }
  0x8a   : > { %v219_v9 = vmul.f32 %v217_v7, %v196_v2  ;;  %v366_v7 = vmax.f32 %v594_v25, 0.0 }
  0x8c   : > { %236 = vperm.xlu1 %511, %v213_v6   ;;  %515 = vset.pattern.permute.xlu0 %v536_v1 }
  0x8d   : > { %278 = vperm.xlu0 %515, %v196_v2  }
  0x90   : > { %513 = vset.pattern.permute.xlu1 %v535_v0 }
  0x91   : > { %256 = vperm.xlu1 %513, %v213_v6   ;;  %518 = vset.pattern.permute.xlu0 %v539_v8  ;;  %v311_v6 = vrot.slane %v580_v11, %v310_v63 }
  0x92   : > { %305 = vperm.xlu0 %518, %v196_v2  }
  0x95   : > { %514 = vset.pattern.permute.xlu1 %v540_v10 }
  0x96   : > { %269 = vperm.xlu1 %514, %v219_v9  }
  0x9a   : > { %516 = vset.pattern.permute.xlu1 %v535_v0 }
  0x9b   : > { %287 = vperm.xlu1 %516, %v196_v2  }
  0x9f   : > { %517 = vset.pattern.permute.xlu1 %v540_v10 }
  0xa0   : > { %296 = vperm.xlu1 %517, %v196_v2   ;;  %v302_v2 = vrot.slane %v580_v11, %v265_v30 }
 0x107   : > { %v227_v18 = vpop.permute.xlu1 %226  ;;  %v248_v29 = vpop.permute.xlu0 %247 }
 0x108   : > { %v229_v32 = vmin.f32 %v223_v23, %v227_v18  ;;  %v250_v35 = vmin.f32 %v245_v26, %v248_v29 }
 0x10b   : > { %v237_v24 = vpop.permute.xlu1 %236 }
 0x10c   : > { %v239_v27 = vmax.f32 %v233_v21, %v237_v24  ;;  %v279_v59 = vpop.permute.xlu0 %278 }
 0x10d   : > { %v285_v1 = vsub.f32 %v279_v59, %v284_v58 }
 0x10e   : > { %v240_v36 = vsub.f32 %v229_v32, %v239_v27 }
 0x10f   : > { %v313_v9 = vmul.f32 %v285_v1, %v285_v1 }
 0x110   : > { %v257_v34 = vpop.permute.xlu1 %256  ;;  %v241_v41 = vmax.f32 %v240_v36, 0.0 }
 0x111   : > { %v259_v37 = vmax.f32 %v254_v28, %v257_v34  ;;  %v306_v13 = vpop.permute.xlu0 %305 }
 0x112   : > { %v312_v20 = vsub.f32 %v306_v13, %v311_v6 }
 0x113   : > { %v260_v39 = vsub.f32 %v250_v35, %v259_v37 }
 0x114   : > { %v318_v28 = vmul.f32 %v312_v20, %v312_v20 }
 0x115   : > { %v261_v42 = vmax.f32 %v260_v39, 0.0  ;;  %v270_v43 = vpop.permute.xlu1 %269 }
 0x116   : > { %v272_v44 = vadd.f32 %v270_v43, %v266_v38 }
 0x117   : > { %v262_v45 = vmul.f32 %v261_v42, %v241_v41 }
 0x119   : > { %v273_v47 = vsub.f32 %v272_v44, %v262_v45 }
 0x11a   : > { %v288_v55 = vpop.permute.xlu1 %287 }
 0x11b   : > { %v274_v48 = vmax.f32 %v273_v47, 1e-12  ;;  %v294_v0 = vsub.f32 %v288_v55, %v293_v57 }
 0x11d   : > { %521 = vrcp.f32 %v274_v48  ;;  %v314_v8 = vmul.f32 %v294_v0, %v294_v0 }
 0x11e   : > { %523 = vlog2.f32 %v373_v52 }
 0x11f   : > { %v297_v3 = vpop.permute.xlu1 %296  ;;  %v315_v11 = vadd.f32 %v314_v8, %v313_v9 }
 0x120   : > { %v303_v10 = vsub.f32 %v297_v3, %v302_v2 }
 0x122   : > { %v316_v21 = vmul.f32 %v303_v10, %v303_v10 }
 0x124   : > { %v317_v27 = vadd.f32 %v316_v21, %v315_v11 }
 0x127   : > { %v522_v50 = vpop.eup %521 }
 0x128   : > { %v276_v51 = vmul.f32 %v522_v50, %v262_v45  ;;  %v524_v5 = vpop.eup %523 }
 0x129   : > { %v375_v19 = vmul.f32 0.6931472, %v524_v5 }
 0x12a   : > { %v320_v53 = vrot.slane %v276_v51, 4 }
 0x12c   : > { %v321_v54 = vmax.f32 %v276_v51, %v320_v53 }
 0x12e   : > { %v322_v56 = vrot.slane %v321_v54, 2 }
 0x130   : > { %v323_v60 = vmax.f32 %v321_v54, %v322_v56 }
 0x132   : > { %v324_v62 = vrot.slane %v323_v60, 1 }
 0x134   : > { %v325_v4 = vmax.f32 %v323_v60, %v324_v62 }
 0x136   : > { %vm329_vm1 = vcmp.gt.f32.partialorder %v325_v4, 0.5  ;;  %vm334_vm2 = vcmp.eq.f32.partialorder %v276_v51, %v325_v4 }
 0x137   : > { %vm330_vm3 = vmand %vm329_vm1, %vm328_vm0  ;;  %v335_v12 = vsel %vm334_vm2, %v583_v14, 8 }
 0x138   : > { %v331_v16 = vsel %vm330_vm3, 1.0, %v541_v15  ;;  %v336_v17 = vrot.slane %v335_v12, 4 }
 0x139   : > { %356 = vadd.xlane.f32.xlu1 %v331_v16  ;;  %v367_v18 = vmul.f32 %v331_v16, %v594_v25  ;;  %v319_v25 = vadd.f32 %v318_v28, %v317_v27 }
 0x13a   : > { %vm337_vm4 = vcmp.lt.s32.totalorder %v335_v12, %v336_v17 }
 0x13b   : > { %v338_v22 = vsel %vm337_vm4, %v335_v12, %v336_v17  ;;  %v368_v23 = vsub.f32 %v366_v7, %v367_v18 }
 0x13c   : > { %v339_v24 = vrot.slane %v338_v22, 2 }
 0x13d   : > { %v376_v26 = vadd.f32 %v375_v19, %v368_v23 }
 0x13e   : > { %vm340_vm6 = vcmp.lt.s32.totalorder %v338_v22, %v339_v24 }
 0x13f   : > { %v341_v29 = vsel %vm340_vm6, %v338_v22, %v339_v24  ;;  %v377_v30 = vsel %vm328_vm0, %v376_v26, 0.0 }
 0x140   : > { %v342_v31 = vrot.slane %v341_v29, 1  ;;  %v379_v32 = vsel %vm378_vm5, %v377_v30, 0.0 }
 0x141   : > { %380 = vadd.xlane.f32.xlu1 %v379_v32 }
 0x142   : > { %vm343_vm7 = vcmp.lt.s32.totalorder %v341_v29, %v342_v31 }
 0x143   : > { %v344_v33 = vsel %vm343_vm7, %v341_v29, %v342_v31 }
 0x144   : > { %vm345_vm8 = vcmp.eq.s32.totalorder %v583_v14, %v344_v33 }
 0x145   : > { %v346_v34 = vsel %vm345_vm8, %v319_v25, 0.0 }
 0x146   : > { %v347_v35 = vrot.slane %v346_v34, 4 }
 0x148   : > { %v348_v36 = vadd.f32 %v347_v35, %v346_v34 }
 0x14a   : > { %v349_v37 = vrot.slane %v348_v36, 2 }
 0x14c   : > { %v350_v38 = vadd.f32 %v349_v37, %v348_v36 }
 0x14e   : > { %v351_v39 = vrot.slane %v350_v38, 1 }
 0x150   : > { %v352_v40 = vadd.f32 %v351_v39, %v350_v38 }
 0x152   : > { %v353_v41 = vmul.f32 %v352_v40, %v331_v16 }
 0x154   : > { %354 = vadd.xlane.f32.xlu0 %v353_v41 }
 0x1c6   : > { %v357_v42 = vpop.xlane.xlu1 %356 }
 0x1c7   : > { %v359_v43 = vmul.f32 4.0, %v357_v42  ;;  %v364_v47 = vsub.f32 16.0, %v357_v42  ;;  %vm358_vm9 = vcmp.gt.f32.partialorder %v357_v42, 0.0 }
 0x1c9   : > { %v360_v44 = vmax.f32 %v359_v43, 1.0  ;;  %v365_v51 = vmul.f32 0.1, %v364_v47 }
 0x1cb   : > { %525 = vrcp.f32 %v360_v44 }
 0x1ce   : > { %v381_v45 = vpop.xlane.xlu1 %380 }
 0x1cf   : > { %v382_v14 = vmul.f32 0.0625, %v381_v45 }
 0x1d5   : > { %v526_v46 = vpop.eup %525 }
 0x1e1   : > { %v355_v48 = vpop.xlane.xlu0 %354 }
 0x1e2   : > { %v362_v49 = vmul.f32 %v526_v46, %v355_v48 }
 0x1e4   : > { %v363_v50 = vsel %vm358_vm9, %v362_v49, 0.0 }
 0x1e5   : > { %v383_v52 = vadd.f32 %v382_v14, %v363_v50 }
 0x1e7   : > { %v384_v53 = vadd.f32 %v383_v52, %v365_v51 }
 0x1e9   : > { %385 = vxpose.xlu0.b32.start.end [1/1] (short) (narrow) %v384_v53, 8 }
 0x269   : > { %v401_v54 = vpop.trf.xlu0 }
 0x26a   : > { %418 = vst.msk [vmem:[%s194_s29] sm:$0x1] %vm417_vm10, %v401_v54 }
 0x26b PF: > { %s13_s12 = sadd.s32 1, %s533_s12  }
 0x26c   : > { %p10_p4 = scmp.ge.s32.totalorder %s13_s12, 4  }
 0x26e   :  { %12 = sbr.rel (!%p10_p4) target bundleno = 1 (0x1), region = 68 }

</bundles_post_ra>
